<compile_context>
chip_gen: v6e
topology: v6e:2x2x1
jax: 0.10.0
libtpu: 0.0.40
codegen_flags: <defaults>
</compile_context>

<pallas_src>
import jax
import jax.numpy as jnp
from jax import lax
from jax.experimental import pallas as pl
from jax.experimental.pallas import tpu as pltpu


def _unprocess_kernel(rot6_ref, pos_ref, root_ref, grot_ref, gpos_ref):
    rot6 = rot6_ref[...]   # [6, 1, J, tt]  ortho-6D planes (row-major: m00..m02, m10..m12)
    pos = pos_ref[...]     # [3, 1, J, tt]  local position planes (x, y, z)
    root = root_ref[...]   # [4, 1, 1, tt]  (W=cos(th/2), Y=sin(th/2), X, Z)

    shp = rot6.shape[1:]   # (1, J, tt)
    eps = 1e-12

    # ---- ortho-6D -> rotation-matrix rows (Gram-Schmidt), pytorch3d convention
    a1x, a1y, a1z = rot6[0], rot6[1], rot6[2]
    a2x, a2y, a2z = rot6[3], rot6[4], rot6[5]

    inv1 = lax.rsqrt(a1x * a1x + a1y * a1y + a1z * a1z + eps)      # EUP slot
    b1x, b1y, b1z = a1x * inv1, a1y * inv1, a1z * inv1
    d = b1x * a2x + b1y * a2y + b1z * a2z
    u2x, u2y, u2z = a2x - d * b1x, a2y - d * b1y, a2z - d * b1z
    inv2 = lax.rsqrt(u2x * u2x + u2y * u2y + u2z * u2z + eps)      # EUP slot
    b2x, b2y, b2z = u2x * inv2, u2y * inv2, u2z * inv2
    b3x = b1y * b2z - b1z * b2y
    b3y = b1z * b2x - b1x * b2z
    b3z = b1x * b2y - b1y * b2x
    # matrix rows: row0 = b1, row1 = b2, row2 = b3

    # ---- rotation matrix -> quaternion (w-first), copysign method
    # TODO(synk): pytorch3d.matrix_to_quaternion uses the best-conditioned branch;
    # the copysign form is equivalent for non-degenerate rotations (w != 0).
    qw = 0.5 * jnp.sqrt(jnp.maximum(0.0, 1.0 + b1x + b2y + b3z))
    qx = 0.5 * jnp.sqrt(jnp.maximum(0.0, 1.0 + b1x - b2y - b3z))
    qy = 0.5 * jnp.sqrt(jnp.maximum(0.0, 1.0 - b1x + b2y - b3z))
    qz = 0.5 * jnp.sqrt(jnp.maximum(0.0, 1.0 - b1x - b2y + b3z))
    qx = qx * jnp.where(b3y - b2z >= 0.0, 1.0, -1.0)   # sign(m21 - m12)
    qy = qy * jnp.where(b1z - b3x >= 0.0, 1.0, -1.0)   # sign(m02 - m20)
    qz = qz * jnp.where(b2x - b1y >= 0.0, 1.0, -1.0)   # sign(m10 - m01)

    # ---- hoisted broadcasts of per-frame root quantities over the joint axis
    W0, Y0, X0, Z0 = root[0], root[1], root[2], root[3]            # [1, 1, tt]
    W = jnp.broadcast_to(W0, shp)
    Y = jnp.broadcast_to(Y0, shp)
    X = jnp.broadcast_to(X0, shp)
    Z = jnp.broadcast_to(Z0, shp)
    c = jnp.broadcast_to(1.0 - 2.0 * (Y0 * Y0), shp)               # cos(theta)
    s = jnp.broadcast_to(2.0 * (W0 * Y0), shp)                     # sin(theta)

    # ---- global_rot = yaw_quat (x) local_quat, yaw_quat = (W, 0, Y, 0)
    # TODO(synk): pytorch3d.quaternion_multiply also standardizes the sign
    # (real part >= 0); omitted here (q and -q are the same rotation).
    grot_ref[0] = W * qw - Y * qy
    grot_ref[1] = W * qx + Y * qz
    grot_ref[2] = W * qy + Y * qw
    grot_ref[3] = W * qz - Y * qx

    # ---- global_pos = R_yaw @ local_pos + (X, 0, Z)
    px, py, pz = pos[0], pos[1], pos[2]
    gpos_ref[0] = c * px + s * pz + X
    gpos_ref[1] = py
    gpos_ref[2] = c * pz - s * px + Z


def un_process_data(batch):
    """JAX/Pallas equivalent of UnProcessData.forward.

    batch keys:
      root_rvel : [B, T-1, 1, 1]  per-frame root yaw angular velocity
      local_pos : [B, T, J, 3]
      local_rot : [B, T, J, 6]    ortho-6D local rotations
      root_vel  : [B, T-1, 1, 2]  root XZ velocity (in root frame)
    Returns (global_pos [B, T, J, 3], global_rot [B, T, J, 4]).
    """
    local_pos = batch["local_pos"].astype(jnp.float32)
    local_rot = batch["local_rot"].astype(jnp.float32)
    root_rvel = batch["root_rvel"].astype(jnp.float32)
    root_vel = batch["root_vel"].astype(jnp.float32)

    B, T, J, _ = local_pos.shape
    assert T >= 2

    # ---- tiny sequential root path (O(B*T)) in plain JAX --------------------
    # TODO(synk): the time-cumulative scans (get_global_rotation/get_global_xz
    # integration) have no clean tiled-Pallas form; they are kept in XLA glue.
    rvel = root_rvel.reshape(B, T - 1)
    theta = jnp.concatenate(
        [jnp.zeros((B, 1), jnp.float32), jnp.cumsum(rvel, axis=1)], axis=1)   # [B, T]
    W = jnp.cos(0.5 * theta)
    Y = jnp.sin(0.5 * theta)

    c = 1.0 - 2.0 * Y * Y            # cos(theta)
    s = 2.0 * W * Y                  # sin(theta)
    vxz = root_vel.reshape(B, T - 1, 2)
    rvx = c[:, :-1] * vxz[..., 0] + s[:, :-1] * vxz[..., 1]
    rvz = c[:, :-1] * vxz[..., 1] - s[:, :-1] * vxz[..., 0]
    X = jnp.concatenate(
        [jnp.zeros((B, 1), jnp.float32), jnp.cumsum(rvx, axis=1)], axis=1)    # [B, T]
    Z = jnp.concatenate(
        [jnp.zeros((B, 1), jnp.float32), jnp.cumsum(rvz, axis=1)], axis=1)    # [B, T]
    root = jnp.stack([W, Y, X, Z], axis=0)[:, :, None, :]                     # [4, B, 1, T]

    # ---- lane-dense SoA layout: [C, B, J, T] (T on lanes, J on sublanes) ----
    rot6_soa = jnp.transpose(local_rot, (3, 0, 2, 1))    # [6, B, J, T]
    pos_soa = jnp.transpose(local_pos, (3, 0, 2, 1))     # [3, B, J, T]

    # time tile: multiple of 128 when possible, else full extent (always valid)
    if T % 512 == 0:
        tt = 512
    elif T % 256 == 0:
        tt = 256
    elif T % 128 == 0:
        tt = 128
    else:
        tt = T
    grid = (B, T // tt)

    def big_spec(C):
        return pl.BlockSpec((C, 1, J, tt), lambda b, t: (0, b, 0, t))

    root_spec = pl.BlockSpec((4, 1, 1, tt), lambda b, t: (0, b, 0, t))

    grot_soa, gpos_soa = pl.pallas_call(
        _unprocess_kernel,
        out_shape=(
            jax.ShapeDtypeStruct((4, B, J, T), jnp.float32),   # global_rot planes
            jax.ShapeDtypeStruct((3, B, J, T), jnp.float32),   # global_pos planes
        ),
        grid=grid,
        in_specs=[big_spec(6), big_spec(3), root_spec],
        out_specs=(big_spec(4), big_spec(3)),
        compiler_params=pltpu.CompilerParams(
            dimension_semantics=("parallel", "parallel")),
    )(rot6_soa, pos_soa, root)

    global_rot = jnp.transpose(grot_soa, (1, 3, 2, 0))   # [B, T, J, 4]
    global_pos = jnp.transpose(gpos_soa, (1, 3, 2, 0))   # [B, T, J, 3]
    return global_pos, global_rot


if __name__ == "__main__":
    B, T, J = 2, 8, 8
    key = jax.random.PRNGKey(0)
    k1, k2, k3, k4 = jax.random.split(key, 4)
    batch = {
        "root_rvel": 0.1 * jax.random.normal(k1, (B, T - 1, 1, 1), jnp.float32),
        "local_pos": jax.random.normal(k2, (B, T, J, 3), jnp.float32),
        "local_rot": jax.random.normal(k3, (B, T, J, 6), jnp.float32),
        "root_vel": 0.1 * jax.random.normal(k4, (B, T - 1, 1, 2), jnp.float32),
    }

    global_pos, global_rot = un_process_data(batch)
    global_pos, global_rot = jax.block_until_ready((global_pos, global_rot))

    assert global_pos.shape == (B, T, J, 3)
    assert global_rot.shape == (B, T, J, 4)
    assert bool(jnp.all(jnp.isfinite(global_pos)))
    assert bool(jnp.all(jnp.isfinite(global_rot)))
    print("KERNEL_OK")
</pallas_src>

<mosaic_0001>
module attributes {stable_mosaic.version = 11 : i64} {
  func.func @_unprocess_kernel(%arg0: i32, %arg1: i32, %arg2: memref<6x1x8x8xf32, #tpu.memory_space<vmem>>, %arg3: memref<3x1x8x8xf32, #tpu.memory_space<vmem>>, %arg4: memref<4x1x1x8xf32, #tpu.memory_space<vmem>>, %arg5: memref<4x1x8x8xf32, #tpu.memory_space<vmem>>, %arg6: memref<3x1x8x8xf32, #tpu.memory_space<vmem>>) attributes {dimension_semantics = [#tpu.dimension_semantics<parallel>, #tpu.dimension_semantics<parallel>], iteration_bounds = array<i64: 2, 1>, scalar_prefetch = 0 : i64, scratch_operands = 0 : i64, tpu.core_type = #tpu.core_type<tc>, window_params = [{transform_indices = @transform_0, window_bounds = array<i64: 6, 1, 8, 8>}, {transform_indices = @transform_1, window_bounds = array<i64: 3, 1, 8, 8>}, {transform_indices = @transform_2, window_bounds = array<i64: 4, 1, 1, 8>}, {transform_indices = @transform_3, window_bounds = array<i64: 4, 1, 8, 8>}, {transform_indices = @transform_4, window_bounds = array<i64: 3, 1, 8, 8>}]} {
    %c0 = arith.constant 0 : index
    %c0_0 = arith.constant 0 : index
    %c0_1 = arith.constant 0 : index
    %c0_2 = arith.constant 0 : index
    %0 = vector.load %arg2[%c0, %c0_0, %c0_1, %c0_2] : memref<6x1x8x8xf32, #tpu.memory_space<vmem>>, vector<6x1x8x8xf32>
    %c0_3 = arith.constant 0 : index
    %c0_4 = arith.constant 0 : index
    %c0_5 = arith.constant 0 : index
    %c0_6 = arith.constant 0 : index
    %1 = vector.load %arg3[%c0_3, %c0_4, %c0_5, %c0_6] : memref<3x1x8x8xf32, #tpu.memory_space<vmem>>, vector<3x1x8x8xf32>
    %c0_7 = arith.constant 0 : index
    %c0_8 = arith.constant 0 : index
    %c0_9 = arith.constant 0 : index
    %c0_10 = arith.constant 0 : index
    %2 = vector.load %arg4[%c0_7, %c0_8, %c0_9, %c0_10] : memref<4x1x1x8xf32, #tpu.memory_space<vmem>>, vector<4x1x1x8xf32>
    %3 = vector.extract_strided_slice %0 {offsets = [0, 0, 0, 0], sizes = [1, 1, 8, 8], strides = [1, 1, 1, 1]} : vector<6x1x8x8xf32> to vector<1x1x8x8xf32>
    %4 = vector.shape_cast %3 : vector<1x1x8x8xf32> to vector<1x8x8xf32>
    %5 = vector.extract_strided_slice %0 {offsets = [1, 0, 0, 0], sizes = [1, 1, 8, 8], strides = [1, 1, 1, 1]} : vector<6x1x8x8xf32> to vector<1x1x8x8xf32>
    %6 = vector.shape_cast %5 : vector<1x1x8x8xf32> to vector<1x8x8xf32>
    %7 = vector.extract_strided_slice %0 {offsets = [2, 0, 0, 0], sizes = [1, 1, 8, 8], strides = [1, 1, 1, 1]} : vector<6x1x8x8xf32> to vector<1x1x8x8xf32>
    %8 = vector.shape_cast %7 : vector<1x1x8x8xf32> to vector<1x8x8xf32>
    %9 = vector.extract_strided_slice %0 {offsets = [3, 0, 0, 0], sizes = [1, 1, 8, 8], strides = [1, 1, 1, 1]} : vector<6x1x8x8xf32> to vector<1x1x8x8xf32>
    %10 = vector.shape_cast %9 : vector<1x1x8x8xf32> to vector<1x8x8xf32>
    %11 = vector.extract_strided_slice %0 {offsets = [4, 0, 0, 0], sizes = [1, 1, 8, 8], strides = [1, 1, 1, 1]} : vector<6x1x8x8xf32> to vector<1x1x8x8xf32>
    %12 = vector.shape_cast %11 : vector<1x1x8x8xf32> to vector<1x8x8xf32>
    %13 = vector.extract_strided_slice %0 {offsets = [5, 0, 0, 0], sizes = [1, 1, 8, 8], strides = [1, 1, 1, 1]} : vector<6x1x8x8xf32> to vector<1x1x8x8xf32>
    %14 = vector.shape_cast %13 : vector<1x1x8x8xf32> to vector<1x8x8xf32>
    %15 = arith.mulf %4, %4 : vector<1x8x8xf32>
    %16 = arith.mulf %6, %6 : vector<1x8x8xf32>
    %17 = arith.addf %15, %16 : vector<1x8x8xf32>
    %18 = arith.mulf %8, %8 : vector<1x8x8xf32>
    %19 = arith.addf %17, %18 : vector<1x8x8xf32>
    %cst = arith.constant 9.99999996E-13 : f32
    %20 = vector.broadcast %cst : f32 to vector<1x8x8xf32>
    %21 = arith.addf %19, %20 : vector<1x8x8xf32>
    %22 = math.rsqrt %21 : vector<1x8x8xf32>
    %23 = arith.mulf %4, %22 : vector<1x8x8xf32>
    %24 = arith.mulf %6, %22 : vector<1x8x8xf32>
    %25 = arith.mulf %8, %22 : vector<1x8x8xf32>
    %26 = arith.mulf %23, %10 : vector<1x8x8xf32>
    %27 = arith.mulf %24, %12 : vector<1x8x8xf32>
    %28 = arith.addf %26, %27 : vector<1x8x8xf32>
    %29 = arith.mulf %25, %14 : vector<1x8x8xf32>
    %30 = arith.addf %28, %29 : vector<1x8x8xf32>
    %31 = arith.mulf %30, %23 : vector<1x8x8xf32>
    %32 = arith.subf %10, %31 : vector<1x8x8xf32>
    %33 = arith.mulf %30, %24 : vector<1x8x8xf32>
    %34 = arith.subf %12, %33 : vector<1x8x8xf32>
    %35 = arith.mulf %30, %25 : vector<1x8x8xf32>
    %36 = arith.subf %14, %35 : vector<1x8x8xf32>
    %37 = arith.mulf %32, %32 : vector<1x8x8xf32>
    %38 = arith.mulf %34, %34 : vector<1x8x8xf32>
    %39 = arith.addf %37, %38 : vector<1x8x8xf32>
    %40 = arith.mulf %36, %36 : vector<1x8x8xf32>
    %41 = arith.addf %39, %40 : vector<1x8x8xf32>
    %cst_11 = arith.constant 9.99999996E-13 : f32
    %42 = vector.broadcast %cst_11 : f32 to vector<1x8x8xf32>
    %43 = arith.addf %41, %42 : vector<1x8x8xf32>
    %44 = math.rsqrt %43 : vector<1x8x8xf32>
    %45 = arith.mulf %32, %44 : vector<1x8x8xf32>
    %46 = arith.mulf %34, %44 : vector<1x8x8xf32>
    %47 = arith.mulf %36, %44 : vector<1x8x8xf32>
    %48 = arith.mulf %24, %47 : vector<1x8x8xf32>
    %49 = arith.mulf %25, %46 : vector<1x8x8xf32>
    %50 = arith.subf %48, %49 : vector<1x8x8xf32>
    %51 = arith.mulf %25, %45 : vector<1x8x8xf32>
    %52 = arith.mulf %23, %47 : vector<1x8x8xf32>
    %53 = arith.subf %51, %52 : vector<1x8x8xf32>
    %54 = arith.mulf %23, %46 : vector<1x8x8xf32>
    %55 = arith.mulf %24, %45 : vector<1x8x8xf32>
    %56 = arith.subf %54, %55 : vector<1x8x8xf32>
    %cst_12 = arith.constant 1.000000e+00 : f32
    %57 = vector.broadcast %cst_12 : f32 to vector<1x8x8xf32>
    %58 = arith.addf %57, %23 : vector<1x8x8xf32>
    %59 = arith.addf %58, %46 : vector<1x8x8xf32>
    %60 = arith.addf %59, %56 : vector<1x8x8xf32>
    %cst_13 = arith.constant 0.000000e+00 : f32
    %61 = vector.broadcast %cst_13 : f32 to vector<1x8x8xf32>
    %62 = arith.maximumf %61, %60 : vector<1x8x8xf32>
    %63 = math.sqrt %62 : vector<1x8x8xf32>
    %cst_14 = arith.constant 5.000000e-01 : f32
    %64 = vector.broadcast %cst_14 : f32 to vector<1x8x8xf32>
    %65 = arith.mulf %64, %63 : vector<1x8x8xf32>
    %cst_15 = arith.constant 1.000000e+00 : f32
    %66 = vector.broadcast %cst_15 : f32 to vector<1x8x8xf32>
    %67 = arith.addf %66, %23 : vector<1x8x8xf32>
    %68 = arith.subf %67, %46 : vector<1x8x8xf32>
    %69 = arith.subf %68, %56 : vector<1x8x8xf32>
    %cst_16 = arith.constant 0.000000e+00 : f32
    %70 = vector.broadcast %cst_16 : f32 to vector<1x8x8xf32>
    %71 = arith.maximumf %70, %69 : vector<1x8x8xf32>
    %72 = math.sqrt %71 : vector<1x8x8xf32>
    %cst_17 = arith.constant 5.000000e-01 : f32
    %73 = vector.broadcast %cst_17 : f32 to vector<1x8x8xf32>
    %74 = arith.mulf %73, %72 : vector<1x8x8xf32>
    %cst_18 = arith.constant 1.000000e+00 : f32
    %75 = vector.broadcast %cst_18 : f32 to vector<1x8x8xf32>
    %76 = arith.subf %75, %23 : vector<1x8x8xf32>
    %77 = arith.addf %76, %46 : vector<1x8x8xf32>
    %78 = arith.subf %77, %56 : vector<1x8x8xf32>
    %cst_19 = arith.constant 0.000000e+00 : f32
    %79 = vector.broadcast %cst_19 : f32 to vector<1x8x8xf32>
    %80 = arith.maximumf %79, %78 : vector<1x8x8xf32>
    %81 = math.sqrt %80 : vector<1x8x8xf32>
    %cst_20 = arith.constant 5.000000e-01 : f32
    %82 = vector.broadcast %cst_20 : f32 to vector<1x8x8xf32>
    %83 = arith.mulf %82, %81 : vector<1x8x8xf32>
    %cst_21 = arith.constant 1.000000e+00 : f32
    %84 = vector.broadcast %cst_21 : f32 to vector<1x8x8xf32>
    %85 = arith.subf %84, %23 : vector<1x8x8xf32>
    %86 = arith.subf %85, %46 : vector<1x8x8xf32>
    %87 = arith.addf %86, %56 : vector<1x8x8xf32>
    %cst_22 = arith.constant 0.000000e+00 : f32
    %88 = vector.broadcast %cst_22 : f32 to vector<1x8x8xf32>
    %89 = arith.maximumf %88, %87 : vector<1x8x8xf32>
    %90 = math.sqrt %89 : vector<1x8x8xf32>
    %cst_23 = arith.constant 5.000000e-01 : f32
    %91 = vector.broadcast %cst_23 : f32 to vector<1x8x8xf32>
    %92 = arith.mulf %91, %90 : vector<1x8x8xf32>
    %93 = arith.subf %53, %47 : vector<1x8x8xf32>
    %cst_24 = arith.constant 0.000000e+00 : f32
    %94 = vector.broadcast %cst_24 : f32 to vector<1x8x8xf32>
    %95 = arith.cmpf oge, %93, %94 : vector<1x8x8xf32>
    %cst_25 = arith.constant 1.000000e+00 : f32
    %cst_26 = arith.constant -1.000000e+00 : f32
    %96 = vector.broadcast %cst_25 : f32 to vector<1x8x8xf32>
    %97 = vector.broadcast %cst_26 : f32 to vector<1x8x8xf32>
    %98 = arith.select %95, %96, %97 : vector<1x8x8xi1>, vector<1x8x8xf32>
    %99 = arith.mulf %74, %98 : vector<1x8x8xf32>
    %100 = arith.subf %25, %50 : vector<1x8x8xf32>
    %cst_27 = arith.constant 0.000000e+00 : f32
    %101 = vector.broadcast %cst_27 : f32 to vector<1x8x8xf32>
    %102 = arith.cmpf oge, %100, %101 : vector<1x8x8xf32>
    %cst_28 = arith.constant 1.000000e+00 : f32
    %cst_29 = arith.constant -1.000000e+00 : f32
    %103 = vector.broadcast %cst_28 : f32 to vector<1x8x8xf32>
    %104 = vector.broadcast %cst_29 : f32 to vector<1x8x8xf32>
    %105 = arith.select %102, %103, %104 : vector<1x8x8xi1>, vector<1x8x8xf32>
    %106 = arith.mulf %83, %105 : vector<1x8x8xf32>
    %107 = arith.subf %45, %24 : vector<1x8x8xf32>
    %cst_30 = arith.constant 0.000000e+00 : f32
    %108 = vector.broadcast %cst_30 : f32 to vector<1x8x8xf32>
    %109 = arith.cmpf oge, %107, %108 : vector<1x8x8xf32>
    %cst_31 = arith.constant 1.000000e+00 : f32
    %cst_32 = arith.constant -1.000000e+00 : f32
    %110 = vector.broadcast %cst_31 : f32 to vector<1x8x8xf32>
    %111 = vector.broadcast %cst_32 : f32 to vector<1x8x8xf32>
    %112 = arith.select %109, %110, %111 : vector<1x8x8xi1>, vector<1x8x8xf32>
    %113 = arith.mulf %92, %112 : vector<1x8x8xf32>
    %114 = vector.extract_strided_slice %2 {offsets = [0, 0, 0, 0], sizes = [1, 1, 1, 8], strides = [1, 1, 1, 1]} : vector<4x1x1x8xf32> to vector<1x1x1x8xf32>
    %115 = vector.shape_cast %114 : vector<1x1x1x8xf32> to vector<1x1x8xf32>
    %116 = vector.extract_strided_slice %2 {offsets = [1, 0, 0, 0], sizes = [1, 1, 1, 8], strides = [1, 1, 1, 1]} : vector<4x1x1x8xf32> to vector<1x1x1x8xf32>
    %117 = vector.shape_cast %116 : vector<1x1x1x8xf32> to vector<1x1x8xf32>
    %118 = vector.extract_strided_slice %2 {offsets = [2, 0, 0, 0], sizes = [1, 1, 1, 8], strides = [1, 1, 1, 1]} : vector<4x1x1x8xf32> to vector<1x1x1x8xf32>
    %119 = vector.shape_cast %118 : vector<1x1x1x8xf32> to vector<1x1x8xf32>
    %120 = vector.extract_strided_slice %2 {offsets = [3, 0, 0, 0], sizes = [1, 1, 1, 8], strides = [1, 1, 1, 1]} : vector<4x1x1x8xf32> to vector<1x1x1x8xf32>
    %121 = vector.shape_cast %120 : vector<1x1x1x8xf32> to vector<1x1x8xf32>
    %122 = vector.shape_cast %115 : vector<1x1x8xf32> to vector<1x1x8xf32>
    %123 = vector.broadcast %122 : vector<1x1x8xf32> to vector<1x8x8xf32>
    %124 = vector.shape_cast %117 : vector<1x1x8xf32> to vector<1x1x8xf32>
    %125 = vector.broadcast %124 : vector<1x1x8xf32> to vector<1x8x8xf32>
    %126 = vector.shape_cast %119 : vector<1x1x8xf32> to vector<1x1x8xf32>
    %127 = vector.broadcast %126 : vector<1x1x8xf32> to vector<1x8x8xf32>
    %128 = vector.shape_cast %121 : vector<1x1x8xf32> to vector<1x1x8xf32>
    %129 = vector.broadcast %128 : vector<1x1x8xf32> to vector<1x8x8xf32>
    %130 = arith.mulf %117, %117 : vector<1x1x8xf32>
    %cst_33 = arith.constant 2.000000e+00 : f32
    %131 = vector.broadcast %cst_33 : f32 to vector<1x1x8xf32>
    %132 = arith.mulf %131, %130 : vector<1x1x8xf32>
    %cst_34 = arith.constant 1.000000e+00 : f32
    %133 = vector.broadcast %cst_34 : f32 to vector<1x1x8xf32>
    %134 = arith.subf %133, %132 : vector<1x1x8xf32>
    %135 = vector.shape_cast %134 : vector<1x1x8xf32> to vector<1x1x8xf32>
    %136 = vector.broadcast %135 : vector<1x1x8xf32> to vector<1x8x8xf32>
    %137 = arith.mulf %115, %117 : vector<1x1x8xf32>
    %cst_35 = arith.constant 2.000000e+00 : f32
    %138 = vector.broadcast %cst_35 : f32 to vector<1x1x8xf32>
    %139 = arith.mulf %138, %137 : vector<1x1x8xf32>
    %140 = vector.shape_cast %139 : vector<1x1x8xf32> to vector<1x1x8xf32>
    %141 = vector.broadcast %140 : vector<1x1x8xf32> to vector<1x8x8xf32>
    %142 = arith.mulf %123, %65 : vector<1x8x8xf32>
    %143 = arith.mulf %125, %106 : vector<1x8x8xf32>
    %144 = arith.subf %142, %143 : vector<1x8x8xf32>
    %c0_36 = arith.constant 0 : index
    %c0_37 = arith.constant 0 : index
    %c0_38 = arith.constant 0 : index
    %c0_39 = arith.constant 0 : index
    %145 = vector.load %arg5[%c0_36, %c0_37, %c0_38, %c0_39] : memref<4x1x8x8xf32, #tpu.memory_space<vmem>>, vector<1x1x8x8xf32>
    %146 = vector.shape_cast %145 : vector<1x1x8x8xf32> to vector<1x8x8xf32>
    %147 = vector.shape_cast %144 : vector<1x8x8xf32> to vector<1x1x8x8xf32>
    tpu.vector_store %arg5[%c0_36, %c0_37, %c0_38, %c0_39], %147 {strides = array<i32>} : memref<4x1x8x8xf32, #tpu.memory_space<vmem>>, vector<1x1x8x8xf32>,
    %148 = arith.mulf %123, %99 : vector<1x8x8xf32>
    %149 = arith.mulf %125, %113 : vector<1x8x8xf32>
    %150 = arith.addf %148, %149 : vector<1x8x8xf32>
    %c1 = arith.constant 1 : index
    %c0_40 = arith.constant 0 : index
    %c0_41 = arith.constant 0 : index
    %c0_42 = arith.constant 0 : index
    %151 = vector.load %arg5[%c1, %c0_40, %c0_41, %c0_42] : memref<4x1x8x8xf32, #tpu.memory_space<vmem>>, vector<1x1x8x8xf32>
    %152 = vector.shape_cast %151 : vector<1x1x8x8xf32> to vector<1x8x8xf32>
    %153 = vector.shape_cast %150 : vector<1x8x8xf32> to vector<1x1x8x8xf32>
    tpu.vector_store %arg5[%c1, %c0_40, %c0_41, %c0_42], %153 {strides = array<i32>} : memref<4x1x8x8xf32, #tpu.memory_space<vmem>>, vector<1x1x8x8xf32>,
    %154 = arith.mulf %123, %106 : vector<1x8x8xf32>
    %155 = arith.mulf %125, %65 : vector<1x8x8xf32>
    %156 = arith.addf %154, %155 : vector<1x8x8xf32>
    %c2 = arith.constant 2 : index
    %c0_43 = arith.constant 0 : index
    %c0_44 = arith.constant 0 : index
    %c0_45 = arith.constant 0 : index
    %157 = vector.load %arg5[%c2, %c0_43, %c0_44, %c0_45] : memref<4x1x8x8xf32, #tpu.memory_space<vmem>>, vector<1x1x8x8xf32>
    %158 = vector.shape_cast %157 : vector<1x1x8x8xf32> to vector<1x8x8xf32>
    %159 = vector.shape_cast %156 : vector<1x8x8xf32> to vector<1x1x8x8xf32>
    tpu.vector_store %arg5[%c2, %c0_43, %c0_44, %c0_45], %159 {strides = array<i32>} : memref<4x1x8x8xf32, #tpu.memory_space<vmem>>, vector<1x1x8x8xf32>,
    %160 = arith.mulf %123, %113 : vector<1x8x8xf32>
    %161 = arith.mulf %125, %99 : vector<1x8x8xf32>
    %162 = arith.subf %160, %161 : vector<1x8x8xf32>
    %c3 = arith.constant 3 : index
    %c0_46 = arith.constant 0 : index
    %c0_47 = arith.constant 0 : index
    %c0_48 = arith.constant 0 : index
    %163 = vector.load %arg5[%c3, %c0_46, %c0_47, %c0_48] : memref<4x1x8x8xf32, #tpu.memory_space<vmem>>, vector<1x1x8x8xf32>
    %164 = vector.shape_cast %163 : vector<1x1x8x8xf32> to vector<1x8x8xf32>
    %165 = vector.shape_cast %162 : vector<1x8x8xf32> to vector<1x1x8x8xf32>
    tpu.vector_store %arg5[%c3, %c0_46, %c0_47, %c0_48], %165 {strides = array<i32>} : memref<4x1x8x8xf32, #tpu.memory_space<vmem>>, vector<1x1x8x8xf32>,
    %166 = vector.extract_strided_slice %1 {offsets = [0, 0, 0, 0], sizes = [1, 1, 8, 8], strides = [1, 1, 1, 1]} : vector<3x1x8x8xf32> to vector<1x1x8x8xf32>
    %167 = vector.shape_cast %166 : vector<1x1x8x8xf32> to vector<1x8x8xf32>
    %168 = vector.extract_strided_slice %1 {offsets = [1, 0, 0, 0], sizes = [1, 1, 8, 8], strides = [1, 1, 1, 1]} : vector<3x1x8x8xf32> to vector<1x1x8x8xf32>
    %169 = vector.shape_cast %168 : vector<1x1x8x8xf32> to vector<1x8x8xf32>
    %170 = vector.extract_strided_slice %1 {offsets = [2, 0, 0, 0], sizes = [1, 1, 8, 8], strides = [1, 1, 1, 1]} : vector<3x1x8x8xf32> to vector<1x1x8x8xf32>
    %171 = vector.shape_cast %170 : vector<1x1x8x8xf32> to vector<1x8x8xf32>
    %172 = arith.mulf %136, %167 : vector<1x8x8xf32>
    %173 = arith.mulf %141, %171 : vector<1x8x8xf32>
    %174 = arith.addf %172, %173 : vector<1x8x8xf32>
    %175 = arith.addf %174, %127 : vector<1x8x8xf32>
    %c0_49 = arith.constant 0 : index
    %c0_50 = arith.constant 0 : index
    %c0_51 = arith.constant 0 : index
    %c0_52 = arith.constant 0 : index
    %176 = vector.load %arg6[%c0_49, %c0_50, %c0_51, %c0_52] : memref<3x1x8x8xf32, #tpu.memory_space<vmem>>, vector<1x1x8x8xf32>
    %177 = vector.shape_cast %176 : vector<1x1x8x8xf32> to vector<1x8x8xf32>
    %178 = vector.shape_cast %175 : vector<1x8x8xf32> to vector<1x1x8x8xf32>
    tpu.vector_store %arg6[%c0_49, %c0_50, %c0_51, %c0_52], %178 {strides = array<i32>} : memref<3x1x8x8xf32, #tpu.memory_space<vmem>>, vector<1x1x8x8xf32>,
    %c1_53 = arith.constant 1 : index
    %c0_54 = arith.constant 0 : index
    %c0_55 = arith.constant 0 : index
    %c0_56 = arith.constant 0 : index
    %179 = vector.load %arg6[%c1_53, %c0_54, %c0_55, %c0_56] : memref<3x1x8x8xf32, #tpu.memory_space<vmem>>, vector<1x1x8x8xf32>
    %180 = vector.shape_cast %179 : vector<1x1x8x8xf32> to vector<1x8x8xf32>
    %181 = vector.shape_cast %169 : vector<1x8x8xf32> to vector<1x1x8x8xf32>
    tpu.vector_store %arg6[%c1_53, %c0_54, %c0_55, %c0_56], %181 {strides = array<i32>} : memref<3x1x8x8xf32, #tpu.memory_space<vmem>>, vector<1x1x8x8xf32>,
    %182 = arith.mulf %136, %171 : vector<1x8x8xf32>
    %183 = arith.mulf %141, %167 : vector<1x8x8xf32>
    %184 = arith.subf %182, %183 : vector<1x8x8xf32>
    %185 = arith.addf %184, %129 : vector<1x8x8xf32>
    %c2_57 = arith.constant 2 : index
    %c0_58 = arith.constant 0 : index
    %c0_59 = arith.constant 0 : index
    %c0_60 = arith.constant 0 : index
    %186 = vector.load %arg6[%c2_57, %c0_58, %c0_59, %c0_60] : memref<3x1x8x8xf32, #tpu.memory_space<vmem>>, vector<1x1x8x8xf32>
    %187 = vector.shape_cast %186 : vector<1x1x8x8xf32> to vector<1x8x8xf32>
    %188 = vector.shape_cast %185 : vector<1x8x8xf32> to vector<1x1x8x8xf32>
    tpu.vector_store %arg6[%c2_57, %c0_58, %c0_59, %c0_60], %188 {strides = array<i32>} : memref<3x1x8x8xf32, #tpu.memory_space<vmem>>, vector<1x1x8x8xf32>,
    return
  }
  func.func @transform_0(%arg0: i32, %arg1: i32) -> (i32, i32, i32, i32) {
    %c0_i32 = arith.constant 0 : i32
    %c0_i32_0 = arith.constant 0 : i32
    %c0_i32_1 = arith.constant 0 : i32
    return %c0_i32, %arg0, %c0_i32_0, %arg1 : i32, i32, i32, i32
  }
  func.func @transform_1(%arg0: i32, %arg1: i32) -> (i32, i32, i32, i32) {
    %c0_i32 = arith.constant 0 : i32
    %c0_i32_0 = arith.constant 0 : i32
    %c0_i32_1 = arith.constant 0 : i32
    return %c0_i32, %arg0, %c0_i32_0, %arg1 : i32, i32, i32, i32
  }
  func.func @transform_2(%arg0: i32, %arg1: i32) -> (i32, i32, i32, i32) {
    %c0_i32 = arith.constant 0 : i32
    %c0_i32_0 = arith.constant 0 : i32
    %c0_i32_1 = arith.constant 0 : i32
    return %c0_i32, %arg0, %c0_i32_0, %arg1 : i32, i32, i32, i32
  }
  func.func @transform_3(%arg0: i32, %arg1: i32) -> (i32, i32, i32, i32) {
    %c0_i32 = arith.constant 0 : i32
    %c0_i32_0 = arith.constant 0 : i32
    %c0_i32_1 = arith.constant 0 : i32
    return %c0_i32, %arg0, %c0_i32_0, %arg1 : i32, i32, i32, i32
  }
  func.func @transform_4(%arg0: i32, %arg1: i32) -> (i32, i32, i32, i32) {
    %c0_i32 = arith.constant 0 : i32
    %c0_i32_0 = arith.constant 0 : i32
    %c0_i32_1 = arith.constant 0 : i32
    return %c0_i32, %arg0, %c0_i32_0, %arg1 : i32, i32, i32, i32
  }
}

</mosaic_0001>

<bundles_post_ra>
// kernel: tpu_custom_call.1
= control target key start
LH: loop header
LB: loop body
LE: loop exit
PB: predicated region body
PF: predicated region fallthrough
CT: control target
= control target key end

     0   :  { %s1372_s0 = inlined_call_operand.hbm [shape: f32[6,2,8,8], index: 0, kind: input, shape index: {}]   ;;  %s1373_s1 = inlined_call_operand.hbm [shape: f32[3,2,8,8], index: 1, kind: input, shape index: {}]   ;;  %s1374_s2 = inlined_call_operand.hbm [shape: f32[4,2,1,8], index: 2, kind: input, shape index: {}]   ;;  %s1375_s3 = inlined_call_operand.hbm [shape: f32[4,2,8,8], index: 3, kind: output, shape index: {0}]   ;;  %s1376_s4 = inlined_call_operand.hbm [shape: f32[3,2,8,8], index: 4, kind: output, shape index: {1}]  }
   0x1   :  { %1385 = sst [smem:[#allocation21_spill]] %s1373_s1 }
   0x2   :  { %1386 = sst [smem:[#allocation22_spill]] %s1375_s3 }
   0x3   :  { %1387 = sst [smem:[#allocation23_spill]] %s1376_s4 }
   0x4   :  { %10 = vsyncpa [#allocation3], 0 }
   0x5   :  { %12 = vsyncpa [#allocation3 + $0x1], 0 }
   0x6   :  { %13 = vsyncpa [#allocation6], 0 }
   0x7   :  { %15 = vsyncpa [#allocation6 + $0x1], 0 }
   0x8   :  { %16 = vsyncpa [#allocation4], 0 }
   0x9   :  { %18 = vsyncpa [#allocation4 + $0x1], 0 }
   0xa   :  { %19 = vsyncpa [#allocation10], 0 }
   0xb   :  { %21 = vsyncpa [#allocation10 + $0x1], 0  ;;  %s1073_s15 = smov 0   ;;  %s1075_s16 = smov 0  }
   0xc   :  { %s1077_s17 = smov 0   ;;  %s1079_s18 = smov 0  }
   0xd   :  { %s1081_s19 = smov 0   ;;  %s1083_s20 = smov 0  }
   0xe LB: > { %1388 = sst [smem:[#allocation15_spill]] %s1011_s15  ;;  %s1104_s21 = sadd.s32 4294967295, %s1031_s20   ;;  %s1031_s20 = sphi %s1083_s20, %s27_s20   ;;  %s1027_s19 = sphi %s1081_s19, %s1415_s19   ;;  %s1023_s18 = sphi %s1079_s18, %s1414_s18   ;;  %s1019_s17 = sphi %s1077_s17, %s1410_s17   ;;  %s1015_s16 = sphi %s1075_s16, %s1413_s16   ;;  %s1011_s15 = sphi %s1073_s15, %s1412_s15  }
   0xf   : > { %1389 = sst [smem:[#allocation16_spill]] %s1019_s17  ;;  %s708_s22 = sadd.s32 4294967294, %s1031_s20  }
  0x10   : > { %1390 = sst [smem:[#allocation17_spill]] %s1031_s20  ;;  %s39_s23 = sadd.s32 1, %s1027_s19 }
  0x11   : > { %s48_s24 = sadd.s32 1, %s1019_s17  ;;  %p41_p0 = scmp.ge.s32.totalorder %s39_s23, 2 }
  0x12   : > { %p55_p1 = scmp.ne.s32.totalorder %s1019_s17, %s1015_s16  ;;  %p56_p2 = scmp.eq.s32.totalorder %s1031_s20, 0 }
  0x13   : > { %p61_p3 = scmp.ne.s32.totalorder %s1015_s16, %s1011_s15  ;;  %s1417_s23 = smov (%p41_p0, %s39_s23), 0 }
  0x14   : > { %1391 = sst [smem:[#allocation18_spill]] %s1417_s23  ;;  %p1116_p4 = por %p56_p2, %p55_p1 }
  0x15   : > { %p62_p5 = scmp.eq.s32.totalorder %s1104_s21, 0  ;;  %s43_s26 = ssub.s32 %s1027_s19, %s1417_s23 }
  0x16   : > { %p143_p6 = scmp.eq.s32.totalorder %s1104_s21, 1  ;;  %p46_p7 = scmp.eq.s32.totalorder %s43_s26, 0 }
  0x17   : > { %p1124_p8 = por %p62_p5, %p61_p3  ;;  %p149_p10 = scmp.eq.s32.totalorder %s708_s22, 1 }
  0x18   : > { %p1128_p9 = por %p143_p6, %p55_p1  ;;  %p761_p13 = scmp.lt.s32.totalorder %s1031_s20, 2 }
  0x19   : > { %s1133_s29 = scalar_select %p46_p7, %s1019_s17, %s48_s24  }
  0x1a   : > { %p1135_p11 = por %p149_p10, %p61_p3  ;;  %s1142_s5 = sand.u32 1, %s1019_s17  }
  0x1b   : > { %1395 = sst [smem:[#allocation19_spill]] %s1133_s29  ;;  %s711_s6 = sshll.u32 %s1027_s19, 7 }
  0x1c   : > { %s1396_s30 = scalar_select %p1135_p11, 1, 0 }
  0x1d   : > { %p1147_p0 = pnand %p761_p13, %p1116_p4  ;;  %s218_s8 = sand.u32 1, %s1031_s20  }
  0x1e   : > { %1397 = sst [smem:[#allocation20_spill]] %s1396_s30  ;;  %s731_s9 = smul.u32 24, %s1142_s5 }
  0x1f   : > { %s1399_s1 = sld [smem:[#allocation21_spill]]  ;;  %p715_p1 = scmp.ge.s32.totalorder %s1031_s20, 1 }
  0x20   : > { %p258_p2 = scmp.lt.s32.totalorder %s1031_s20, 3  ;;  %s222_s13 = scalar_lea.vmem [#allocation5], %s731_s9 }
  0x21   : > { %s229_s14 = sshll.u32 %s222_s13, 4  ;;  %s1166_s24 = scalar_lea.sflag [#allocation6], %s218_s8  ;;  %s230_s14 = int_to_ptr.vmem [resolvable:$true] %s229_s14 }
  0x22   : > { %p1162_p3 = pnand %p715_p1, %p258_p2  ;;  %p835_p4 = pneg %p1147_p0 }
  0x23   : > { %s846_s25 = scalar_lea.vmem %s230_s14, 384  ;;  %s1033_s26 = smov [#allocation5]  }
  0x24   : > { %p847_p5 = scmp.ne.s32.totalorder %s230_s14, %s846_s25  ;;  %s851_s10 = sshll.u32 %s1033_s26, 4  ;;  %s852_s10 = int_to_ptr.vmem [resolvable:$false] %s851_s10 }
  0x25   : > { %s1158_s12 = scalar_lea.hbm %s1399_s1, %s711_s6  ;;  %s853_s9 = scalar_lea.vmem %s852_s10, 768 }
  0x26   : > { %p849_p6 = pnand %p847_p5, %p835_p4  ;;  %p854_p10 = scmp.lt.s32.totalorder %s230_s14, %s852_s10 }
  0x27   : > { %p855_p13 = scmp.lt.s32.totalorder %s853_s9, %s846_s25 }
  0x28   : > { %p850_p7 = pneg %p849_p6 }
  0x29   : > { %p856_p1 = por %p855_p13, %p854_p10 }
  0x2b   : > { %p857_p2 = pnand %p856_p1, %p850_p7 }
  0x2d   : > { %860 = shalt.err (!%p857_p2)
}
  0x2e   : > { %s1034_s11 = smov 256   ;;  %s1035_s8 = smov 128  }
  0x2f   : > { %s1036_s13 = smov 8   ;;  %s730_s25 = smul.u32 48, %s1142_s5 }
  0x30   : > { %750 = dma.hbm_to_vmem [thread:$0]  (!%p1147_p0), %s1158_s12, 384, %s230_s14, %s1166_s24, %s1034_s11, %s1035_s8, %s1036_s13  }
  0x31   : > { %s207_s9 = scalar_lea.hbm %s1372_s0, %s711_s6  ;;  %s713_s1 = sshll.u32 %s1142_s5, 2 }
  0x32   : > { %s201_s23 = scalar_lea.vmem [#allocation2], %s730_s25  ;;  %s714_s17 = sshll.u32 %s1027_s19, 4 }
  0x33   : > { %s208_s29 = sshll.u32 %s201_s23, 4  ;;  %s1190_s15 = scalar_lea.hbm %s1374_s2, %s714_s17  ;;  %s209_s29 = int_to_ptr.vmem [resolvable:$true] %s208_s29 }
  0x34   : > { %s198_s3 = scalar_lea.sflag [#allocation3], %s1142_s5  ;;  %s874_s4 = scalar_lea.vmem %s209_s29, 768 }
  0x35   : > { %p875_p5 = scmp.ne.s32.totalorder %s209_s29, %s874_s4  ;;  %s1037_s12 = smov [#allocation2]  }
  0x36   : > { %s879_s14 = sshll.u32 %s1037_s12, 4  ;;  %s880_s14 = int_to_ptr.vmem [resolvable:$false] %s879_s14 }
  0x37   : > { %p877_p6 = pnand %p875_p5, %p835_p4  ;;  %s881_s6 = scalar_lea.vmem %s880_s14, 1536 }
  0x38   : > { %p882_p10 = scmp.lt.s32.totalorder %s209_s29, %s880_s14  ;;  %p883_p13 = scmp.lt.s32.totalorder %s881_s6, %s874_s4 }
  0x39   : > { %p878_p7 = pneg %p877_p6 }
  0x3a   : > { %p884_p1 = por %p883_p13, %p882_p10 }
  0x3c   : > { %p885_p2 = pnand %p884_p1, %p878_p7 }
  0x3e   : > { %888 = shalt.err (!%p885_p2)
}
  0x3f   : > { %747 = dma.hbm_to_vmem [thread:$0]  (!%p1147_p0), %s207_s9, 768, %s209_s29, %s198_s3, %s1034_s11, %s1035_s8, %s1036_s13  }
  0x40   : > { %s243_s17 = scalar_lea.vmem [#allocation7], %s713_s1  ;;  %s1038_s30 = smov [#allocation7]  }
  0x41   : > { %s250_s20 = sshll.u32 %s243_s17, 4  ;;  %s907_s4 = sshll.u32 %s1038_s30, 4  ;;  %s251_s20 = int_to_ptr.vmem [resolvable:$true] %s250_s20  ;;  %s908_s4 = int_to_ptr.vmem [resolvable:$false] %s907_s4 }
  0x42   : > { %s902_s23 = scalar_lea.vmem %s251_s20, 64  ;;  %s909_s5 = scalar_lea.vmem %s908_s4, 128 }
  0x43   : > { %p903_p5 = scmp.ne.s32.totalorder %s251_s20, %s902_s23  ;;  %p910_p7 = scmp.lt.s32.totalorder %s251_s20, %s908_s4 }
  0x44   : > { %p911_p10 = scmp.lt.s32.totalorder %s909_s5, %s902_s23 }
  0x45   : > { %p905_p6 = pnand %p903_p5, %p835_p4 }
  0x46   : > { %p912_p13 = por %p911_p10, %p910_p7 }
  0x47   : > { %p906_p12 = pneg %p905_p6 }
  0x49   : > { %p913_p1 = pnand %p912_p13, %p906_p12 }
  0x4b   : > { %916 = shalt.err (!%p913_p1)
}
  0x4c   : > { %s1039_s25 = smov 32   ;;  %s1040_s1 = smov 16  }
  0x4d   : > { %s1041_s3 = smov 1   ;;  %262 = sbr.rel (%p1162_p3) target bundleno = 204 (0xcc), region = 32 }
  0x4e   : > { %753 = dma.hbm_to_vmem [thread:$0]  (!%p1147_p0), %s1190_s15, 64, %s251_s20, %s1166_s24, %s1039_s25, %s1040_s1, %s1041_s3  }
  0x4f   : > { %s1210_s29 = sand.u32 (!%p1162_p3), 1, %s1015_s16  }
  0x50   : > { %s732_s11 = smul.u32 (!%p1162_p3), 48, %s1210_s29  ;;  %s265_s8 = scalar_lea.sflag (!%p1162_p3), [#allocation3], %s1210_s29 }
  0x52   : > { %s1214_s13 = scalar_lea.vmem [#allocation2], %s732_s11 }
  0x53   : > { %994 = dma.done.wait (%p1124_p8), %s265_s8, 768  }
  0x54   : > { %996 = vsyncadd (%p1124_p8), %s265_s8, 4294966528  ;;  %s273_s15 = sand.u32 1, %s1104_s21   ;;  %s733_s7 = smul.u32 24, %s1210_s29 }
  0x55   : > { %s274_s22 = scalar_lea.sflag [#allocation6], %s273_s15 }
  0x56   : > { %s277_s24 = scalar_lea.vmem [#allocation5], %s733_s7 }
  0x57   : > { %998 = dma.done.wait (%p1124_p8), %s274_s22, 448  }
  0x58   : > { %1000 = vsyncadd (%p1124_p8), %s274_s22, 4294966848  ;;  %v438_v0 = vlaneseq  ;;  %s716_s26 = sshll.u32 %s1210_s29, 2  ;;  %v1228_v2 = vld [vmem:[%s1214_s13] sm:$0xff]  ;;  %v1231_v3 = vld [vmem:[%s1214_s13 + $0x8] sm:$0xff]  ;;  %vm481_vm0 = vcmask 64512   ;;  %s325_s27 = scalar_lea.vmem [#allocation9], %s733_s7 }
  0x59   : > { %v1234_v4 = vld [vmem:[%s1214_s13 + $0x10] sm:$0xff]  ;;  %v339_v5 = vmul.f32 %v1228_v2, %v1228_v2  ;;  %v340_v6 = vmul.f32 %v1231_v3, %v1231_v3  ;;  %s286_s21 = scalar_lea.vmem [#allocation7], %s716_s26  ;;  %v332_v21 = vld [vmem:[%s277_s24] sm:$0xff]  ;;  %s546_s10 = sshll.u32 %s325_s27, 4  ;;  %s1248_s10 = int_to_ptr.vmem [resolvable:$true] %s546_s10 }
  0x5a   : > { %v439_v1 = vshrl.u32 %v438_v0, 7  ;;  %v342_v7 = vmul.f32 %v1234_v4, %v1234_v4  ;;  %v335_v9 = vld [vmem:[%s286_s21] sm:$0x1]  ;;  %v336_v10 = vld [vmem:[%s286_s21 + $0x1] sm:$0x1]  ;;  %v333_v15 = vld [vmem:[%s277_s24 + $0x8] sm:$0xff] }
  0x5b   : > { %v341_v11 = vadd.f32 %v340_v6, %v339_v5  ;;  %v461_v14 = vmul.f32 %v336_v10, %v336_v10  ;;  %v470_v16 = vmul.f32 %v336_v10, %v335_v9  ;;  %723 = vst.msk [vmem:[%s325_s27 + $0x8] sm:$0xff] %vm481_vm0, %v333_v15  ;;  %v334_v22 = vld [vmem:[%s277_s24 + $0x10] sm:$0xff]  ;;  %s726_s9 = sshll.u32 %s1023_s18, 7  ;;  %s1401_s6 = sld [smem:[#allocation23_spill]] }
  0x5c   : > { %v440_v8 = vsub.s32 0, %v439_v1  ;;  %v718_v30 = vld [vmem:[%s286_s21 + $0x2] ss:$0 sm:$0xff]  ;;  %v719_v31 = vld [vmem:[%s286_s21 + $0x3] ss:$0 sm:$0xff]  ;;  %s517_s20 = scalar_lea.sflag [#allocation10], %s1210_s29 }
  0x5d   : > { %v343_v17 = vadd.f32 %v342_v7, %v341_v11  ;;  %v462_v18 = vmul.f32 2.0, %v461_v14  ;;  %v471_v19 = vmul.f32 2.0, %v470_v16  ;;  %s917_s23 = scalar_lea.vmem %s1248_s10, 384  ;;  %s1042_s30 = smov [#allocation9]  }
  0x5e   : > { %v1242_v12 = vrot.slane %v335_v9, %v440_v8  ;;  %v1244_v13 = vrot.slane %v336_v10, %v440_v8  ;;  %p918_p8 = scmp.ne.s32.totalorder %s1248_s10, %s917_s23  ;;  %s921_s4 = sshll.u32 %s1042_s30, 4  ;;  %s922_s4 = int_to_ptr.vmem [resolvable:$false] %s921_s4 }
  0x5f   : > { %v344_v20 = vadd.f32 1e-12, %v343_v17  ;;  %v463_v23 = vsub.f32 1.0, %v462_v18  ;;  %v476_v24 = vrot.slane %v471_v19, %v440_v8  ;;  %s923_s5 = scalar_lea.vmem %s922_s4, 768  ;;  %p924_p3 = scmp.lt.s32.totalorder %s1248_s10, %s922_s4 }
  0x60   : > { %p919_p12 = pnand %p918_p8, %p1128_p9  ;;  %p925_p4 = scmp.lt.s32.totalorder %s923_s5, %s917_s23 }
  0x61   : > { %821 = vrsqrt.f32 %v344_v20  ;;  %v468_v25 = vrot.slane %v463_v23, %v440_v8  ;;  %v499_v26 = vmul.f32 %v476_v24, %v334_v22  ;;  %v506_v27 = vmul.f32 %v476_v24, %v332_v21  ;;  %s1255_s17 = scalar_lea.hbm %s1401_s6, %s726_s9 }
  0x62   : > { %p920_p0 = pneg %p919_p12  ;;  %p926_p2 = por %p925_p4, %p924_p3 }
  0x63   : > { %v498_v28 = vmul.f32 %v468_v25, %v332_v21  ;;  %v505_v29 = vmul.f32 %v468_v25, %v334_v22 }
  0x64   : > { %p927_p5 = pnand %p926_p2, %p920_p0 }
  0x65   : > { %v500_v32 = vadd.f32 %v499_v26, %v498_v28  ;;  %v507_v33 = vsub.f32 %v505_v29, %v506_v27 }
  0x67   : > { %v501_v34 = vadd.f32 %v718_v30, %v500_v32  ;;  %v508_v35 = vadd.f32 %v719_v31, %v507_v33 }
  0x69   : > { %502 = vst.msk [vmem:[%s325_s27] sm:$0xff] %vm481_vm0, %v501_v34  ;;  %724 = vst.msk [vmem:[%s325_s27 + $0x10] sm:$0xff] %vm481_vm0, %v508_v35 }
  0x6a   : > { %930 = shalt.err (!%p927_p5)
}
  0x6b   : > { %s931_s25 = scalar_lea.hbm %s1255_s17, 384  ;;  %s935_s11 = scalar_lea.hbm %s1401_s6, 768 }
  0x6c   : > { %p932_p6 = scmp.ne.s32.totalorder %s1255_s17, %s931_s25  ;;  %p936_p13 = scmp.lt.s32.totalorder %s1255_s17, %s1401_s6 }
  0x6d   : > { %p937_p1 = scmp.lt.s32.totalorder %s935_s11, %s931_s25 }
  0x6e   : > { %p933_p7 = pnand %p932_p6, %p1128_p9 }
  0x6f   : > { %p938_p8 = por %p937_p1, %p936_p13 }
  0x70   : > { %p934_p10 = pneg %p933_p7 }
  0x72   : > { %p939_p12 = pnand %p938_p8, %p934_p10 }
  0x74   : > { %942 = shalt.err (!%p939_p12)
}
  0x75   : > { %s1043_s7 = smov 128   ;;  %s1044_s22 = smov 256   ;;  %v822_v36 = vpop.eup %821  ;;  %v329_v37 = vld [vmem:[%s1214_s13 + $0x18] sm:$0xff]  ;;  %v330_v38 = vld [vmem:[%s1214_s13 + $0x20] sm:$0xff]  ;;  %v331_v39 = vld [vmem:[%s1214_s13 + $0x28] sm:$0xff] }
  0x76   : > { %s1045_s24 = smov 8   ;;  %v346_v40 = vmul.f32 %v822_v36, %v1228_v2  ;;  %v347_v41 = vmul.f32 %v822_v36, %v1231_v3  ;;  %v348_v42 = vmul.f32 %v822_v36, %v1234_v4  ;;  %s717_s13 = sshll.u32 %s1210_s29, 5 }
  0x77   : > { %741 = dma.vmem_to_hbm [thread:$0]  (%p1128_p9), %s1248_s10, 384, %s1255_s17, %s517_s20, %s1043_s7, %s1044_s22, %s1045_s24  }
  0x78   : > { %v349_v43 = vmul.f32 %v346_v40, %v329_v37  ;;  %v350_v44 = vmul.f32 %v347_v41, %v330_v38  ;;  %v352_v45 = vmul.f32 %v348_v42, %v331_v39  ;;  %v402_v61 = vsub.f32 1.0, %v346_v40  ;;  %s318_s26 = scalar_lea.vmem [#allocation8], %s717_s13  ;;  %s1404_s12 = sld [smem:[#allocation22_spill]] }
  0x79   : > { %v379_v0 = vadd.f32 1.0, %v346_v40  ;;  %s530_s21 = sshll.u32 %s318_s26, 4  ;;  %s512_s17 = scalar_lea.sflag [#allocation4], %s1210_s29  ;;  %s1312_s21 = int_to_ptr.vmem [resolvable:$true] %s530_s21 }
  0x7a   : > { %v351_v46 = vadd.f32 %v350_v44, %v349_v43  ;;  %s943_s20 = scalar_lea.vmem %s1312_s21, 512  ;;  %s1047_s23 = smov [#allocation8]  }
  0x7b   : > { %p944_p0 = scmp.ne.s32.totalorder %s1312_s21, %s943_s20  ;;  %s947_s30 = sshll.u32 %s1047_s23, 4  ;;  %s948_s30 = int_to_ptr.vmem [resolvable:$false] %s947_s30 }
  0x7c   : > { %v353_v47 = vadd.f32 %v352_v45, %v351_v46  ;;  %v1046_v46 = vmov -1.0   ;;  %s949_s4 = scalar_lea.vmem %s948_s30, 1024  ;;  %p950_p2 = scmp.lt.s32.totalorder %s1312_s21, %s948_s30 }
  0x7d   : > { %p945_p3 = pnand %p944_p0, %p1128_p9  ;;  %p951_p5 = scmp.lt.s32.totalorder %s949_s4, %s943_s20 }
  0x7e   : > { %v354_v48 = vmul.f32 %v353_v47, %v346_v40  ;;  %v356_v49 = vmul.f32 %v353_v47, %v347_v41  ;;  %v358_v50 = vmul.f32 %v353_v47, %v348_v42  ;;  %s1321_s14 = scalar_lea.hbm %s1404_s12, %s726_s9 }
  0x7f   : > { %p946_p4 = pneg %p945_p3  ;;  %p952_p6 = por %p951_p5, %p950_p2 }
  0x80   : > { %v355_v51 = vsub.f32 %v329_v37, %v354_v48  ;;  %v357_v52 = vsub.f32 %v330_v38, %v356_v49  ;;  %v359_v53 = vsub.f32 %v331_v39, %v358_v50 }
  0x81   : > { %p953_p7 = pnand %p952_p6, %p946_p4 }
  0x82   : > { %v360_v54 = vmul.f32 %v355_v51, %v355_v51  ;;  %v361_v55 = vmul.f32 %v357_v52, %v357_v52  ;;  %v363_v56 = vmul.f32 %v359_v53, %v359_v53 }
  0x84   : > { %v362_v57 = vadd.f32 %v361_v55, %v360_v54 }
  0x86   : > { %v364_v58 = vadd.f32 %v363_v56, %v362_v57 }
  0x88   : > { %v365_v59 = vadd.f32 1e-12, %v364_v58 }
  0x8a   : > { %823 = vrsqrt.f32 %v365_v59 }
  0x97   : > { %v824_v60 = vpop.eup %823 }
  0x98   : > { %v367_v62 = vmul.f32 %v824_v60, %v355_v51  ;;  %v368_v63 = vmul.f32 %v824_v60, %v357_v52  ;;  %v369_v8 = vmul.f32 %v824_v60, %v359_v53 }
  0x9a   : > { %v376_v1 = vmul.f32 %v368_v63, %v346_v40  ;;  %v377_v2 = vmul.f32 %v367_v62, %v347_v41  ;;  %v380_v3 = vadd.f32 %v379_v0, %v368_v63  ;;  %v403_v4 = vadd.f32 %v402_v61, %v368_v63 }
  0x9b   : > { %v391_v6 = vsub.f32 %v379_v0, %v368_v63  ;;  %v414_v7 = vsub.f32 %v402_v61, %v368_v63  ;;  %v370_v19 = vmul.f32 %v369_v8, %v347_v41  ;;  %v371_v20 = vmul.f32 %v368_v63, %v348_v42 }
  0x9c   : > { %v378_v5 = vsub.f32 %v376_v1, %v377_v2  ;;  %v373_v21 = vmul.f32 %v367_v62, %v348_v42  ;;  %v374_v22 = vmul.f32 %v369_v8, %v346_v40  ;;  %v433_v26 = vsub.f32 %v367_v62, %v347_v41 }
  0x9d   : > { %v372_v23 = vsub.f32 %v370_v19, %v371_v20 }
  0x9e   : > { %v381_v9 = vadd.f32 %v380_v3, %v378_v5  ;;  %v404_v10 = vsub.f32 %v403_v4, %v378_v5  ;;  %v392_v11 = vsub.f32 %v391_v6, %v378_v5  ;;  %v415_v14 = vadd.f32 %v414_v7, %v378_v5 }
  0x9f   : > { %v375_v24 = vsub.f32 %v373_v21, %v374_v22  ;;  %v429_v25 = vsub.f32 %v348_v42, %v372_v23  ;;  %vm1291_vm2 = vcmp.ge.f32.partialorder %v433_v26, 0.0 }
  0xa0   : > { %v382_v15 = vmax.f32 %v381_v9, 0.0  ;;  %v405_v16 = vmax.f32 %v404_v10, 0.0  ;;  %v393_v17 = vmax.f32 %v392_v11, 0.0  ;;  %v416_v18 = vmax.f32 %v415_v14, 0.0 }
  0xa1   : > { %v425_v27 = vsub.f32 %v375_v24, %v369_v8  ;;  %vm430_vm1 = vcmp.ge.f32.partialorder %v429_v25, 0.0  ;;  %v435_v55 = vsel %vm1291_vm2, 1.0, %v1046_v46 }
  0xa2   : > { %825 = vrsqrt.f32 %v382_v15  ;;  %vm385_vm3 = vcmp.eq.f32.partialorder %v382_v15, inf  ;;  %vm387_vm4 = vcmp.eq.f32.partialorder %v382_v15, 0.0  ;;  %v388_v30 = vand.u32 2147483648, %v382_v15 }
  0xa3   : > { %827 = vrsqrt.f32 %v405_v16  ;;  %vm426_vm5 = vcmp.ge.f32.partialorder %v425_v27, 0.0  ;;  %vm408_vm6 = vcmp.eq.f32.partialorder %v405_v16, inf  ;;  %vm410_vm7 = vcmp.eq.f32.partialorder %v405_v16, 0.0 }
  0xa4   : > { %829 = vrsqrt.f32 %v393_v17  ;;  %v411_v33 = vand.u32 2147483648, %v405_v16  ;;  %vm396_vm8 = vcmp.eq.f32.partialorder %v393_v17, inf  ;;  %vm398_vm9 = vcmp.eq.f32.partialorder %v393_v17, 0.0 }
  0xa5   : > { %831 = vrsqrt.f32 %v416_v18  ;;  %v399_v36 = vand.u32 2147483648, %v393_v17  ;;  %vm419_vm10 = vcmp.eq.f32.partialorder %v416_v18, inf  ;;  %v422_v40 = vand.u32 2147483648, %v416_v18 }
  0xa6   : > { %vm421_vm11 = vcmp.eq.f32.partialorder %v416_v18, 0.0  ;;  %v431_v47 = vsel %vm430_vm1, 1.0, %v1046_v46  ;;  %v427_v52 = vsel %vm426_vm5, 1.0, %v1046_v46 }
  0xaf   : > { %v826_v29 = vpop.eup %825 }
  0xb0   : > { %v828_v31 = vpop.eup %827  ;;  %v384_v32 = vmul.f32 %v826_v29, %v382_v15 }
  0xb1   : > { %v830_v34 = vpop.eup %829  ;;  %v407_v35 = vmul.f32 %v828_v31, %v405_v16 }
  0xb2   : > { %v832_v37 = vpop.eup %831  ;;  %v386_v38 = vsel %vm385_vm3, %v382_v15, %v384_v32  ;;  %v395_v39 = vmul.f32 %v830_v34, %v393_v17 }
  0xb3   : > { %v389_v41 = vsel %vm387_vm4, %v388_v30, %v386_v38  ;;  %v409_v42 = vsel %vm408_vm6, %v405_v16, %v407_v35  ;;  %v418_v43 = vmul.f32 %v832_v37, %v416_v18 }
  0xb4   : > { %v390_v44 = vmul.f32 0.5, %v389_v41  ;;  %v412_v45 = vsel %vm410_vm7, %v411_v33, %v409_v42  ;;  %v397_v48 = vsel %vm396_vm8, %v393_v17, %v395_v39 }
  0xb5   : > { %v413_v49 = vmul.f32 0.5, %v412_v45  ;;  %v400_v50 = vsel %vm398_vm9, %v399_v36, %v397_v48  ;;  %v420_v51 = vsel %vm419_vm10, %v416_v18, %v418_v43 }
  0xb6   : > { %v401_v53 = vmul.f32 0.5, %v400_v50  ;;  %v423_v54 = vsel %vm421_vm11, %v422_v40, %v420_v51  ;;  %v478_v57 = vmul.f32 %v1242_v12, %v390_v44  ;;  %v489_v59 = vmul.f32 %v1244_v13, %v390_v44 }
  0xb7   : > { %v432_v56 = vmul.f32 %v431_v47, %v413_v49  ;;  %v424_v58 = vmul.f32 0.5, %v423_v54 }
  0xb8   : > { %v428_v60 = vmul.f32 %v427_v52, %v401_v53 }
  0xb9   : > { %v479_v61 = vmul.f32 %v1244_v13, %v432_v56  ;;  %v436_v62 = vmul.f32 %v435_v55, %v424_v58  ;;  %v488_v63 = vmul.f32 %v1242_v12, %v432_v56 }
  0xba   : > { %v483_v0 = vmul.f32 %v1242_v12, %v428_v60  ;;  %v494_v1 = vmul.f32 %v1244_v13, %v428_v60 }
  0xbb   : > { %v480_v2 = vsub.f32 %v478_v57, %v479_v61  ;;  %v484_v3 = vmul.f32 %v1244_v13, %v436_v62  ;;  %v490_v4 = vadd.f32 %v489_v59, %v488_v63  ;;  %v493_v5 = vmul.f32 %v1242_v12, %v436_v62 }
  0xbd   : > { %482 = vst.msk [vmem:[%s318_s26] sm:$0xff] %vm481_vm0, %v480_v2  ;;  %v485_v6 = vadd.f32 %v484_v3, %v483_v0  ;;  %721 = vst.msk [vmem:[%s318_s26 + $0x10] sm:$0xff] %vm481_vm0, %v490_v4  ;;  %v495_v7 = vsub.f32 %v493_v5, %v494_v1 }
  0xbf   : > { %720 = vst.msk [vmem:[%s318_s26 + $0x8] sm:$0xff] %vm481_vm0, %v485_v6  ;;  %722 = vst.msk [vmem:[%s318_s26 + $0x18] sm:$0xff] %vm481_vm0, %v495_v7 }
  0xc0   : > { %956 = shalt.err (!%p953_p7)
}
  0xc1   : > { %s957_s18 = scalar_lea.hbm %s1321_s14, 512  ;;  %s961_s5 = scalar_lea.hbm %s1404_s12, 1024 }
  0xc2   : > { %p958_p10 = scmp.ne.s32.totalorder %s1321_s14, %s957_s18  ;;  %p962_p8 = scmp.lt.s32.totalorder %s1321_s14, %s1404_s12 }
  0xc3   : > { %p963_p12 = scmp.lt.s32.totalorder %s961_s5, %s957_s18 }
  0xc4   : > { %p959_p13 = pnand %p958_p10, %p1128_p9 }
  0xc5   : > { %p964_p0 = por %p963_p12, %p962_p8 }
  0xc6   : > { %p960_p1 = pneg %p959_p13 }
  0xc8   : > { %p965_p3 = pnand %p964_p0, %p960_p1 }
  0xca   : > { %968 = shalt.err (!%p965_p3)
}
  0xcb   : > { %740 = dma.vmem_to_hbm [thread:$0]  (%p1128_p9), %s1312_s21, 512, %s1321_s14, %s512_s17, %s1043_s7, %s1044_s22, %s1045_s24  }
  0xcc PF: > { %s1405_s3 = sld [smem:[#allocation15_spill]] }
  0xcd   : > { %s1407_s8 = sld [smem:[#allocation17_spill]] }
  0xd2   : > { %s561_s15 = sand.u32 1, %s1405_s3  }
  0xd3   : > { %p1408_p4 = scmp.ge.s32.totalorder %s1407_s8, 2  ;;  %s562_s13 = scalar_lea.sflag [#allocation4], %s561_s15 }
  0xd5   : > { %p755_p2 = pnand %p1408_p4, %p1135_p11 }
  0xd7   : > { %p756_p5 = pneg %p755_p2 }
  0xd9   : > { %1002 = dma.done.wait (%p756_p5), %s562_s13, 512  }
  0xda   : > { %1004 = vsyncadd (%p756_p5), %s562_s13, 4294966784  ;;  %s571_s26 = scalar_lea.sflag [#allocation10], %s561_s15 }
  0xdb   : > { %1006 = dma.done.wait (%p756_p5), %s571_s26, 384  }
  0xdc   : > { %1008 = vsyncadd (%p756_p5), %s571_s26, 4294966912  ;;  %s27_s20 = sadd.s32 1, %s1407_s8   ;;  %s1409_s28 = sld [smem:[#allocation16_spill]] }
  0xdd   : > { %p24_p6 = scmp.ge.s32.totalorder %s27_s20, 4   ;;  %s1410_s17 = sld [smem:[#allocation19_spill]] }
  0xde   : > { %s1411_s7 = sld [smem:[#allocation18_spill]]  ;;  %s1412_s15 = smov %s1015_s16 }
  0xdf   : > { %s1414_s18 = smov %s1027_s19 }
  0xe0   :  { %26 = sbr.rel (!%p24_p6) target bundleno = 14 (0xe), region = 123 }
  0xe2   : > { %s1413_s16 = smov %s1409_s28 }
  0xe4   : > { %s1415_s19 = smov %s1411_s7 }
  0xe5   :  { %576 = vsyncpa [#allocation3], 1 }
  0xe6   :  { %578 = vsyncpa [#allocation3 + $0x1], 1 }
  0xe7   :  { %579 = vsyncpa [#allocation6], 1 }
  0xe8   :  { %581 = vsyncpa [#allocation6 + $0x1], 1 }
  0xe9   :  { %582 = vsyncpa [#allocation4], 1 }
  0xea   :  { %584 = vsyncpa [#allocation4 + $0x1], 1 }
  0xeb   :  { %585 = vsyncpa [#allocation10], 1 }
  0xec   :  { %587 = vsyncpa [#allocation10 + $0x1], 1 }

</bundles_post_ra>
